<compile_context>
chip_gen: v5e
topology: v5e:2x2
jax: 0.10.0
libtpu: 0.0.40
codegen_flags: <defaults>
</compile_context>

<pallas_src>
import math
import functools

import jax
import jax.numpy as jnp
from jax.experimental import pallas as pl
from jax.experimental.pallas import tpu as pltpu


def decoder_block_kernel(
    x_ref, mask_ref,
    w_attn_ref, b_attn_ref, w_proj_ref, b_proj_ref,
    w1_ref, b1_ref, w2_ref, b2_ref,
    g1_ref, beta1_ref, g2_ref, beta2_ref,
    o_ref,
    *, heads, eps=1e-5,
):
    BT, S, D = x_ref.shape          # batch_tile, seq, n_state
    H = heads
    dh = D // H
    R = BT * S                       # rows processed by the dense matmuls

    x = x_ref[...].astype(jnp.float32).reshape(R, D)   # [R, D]
    mask = mask_ref[...]                                # [H, S, S] (shared across batch)

    # ---- attention: c_attn (Conv1D) -> per-head SDPA (batched over BT) -> c_proj ----
    c = jnp.dot(x, w_attn_ref[...], preferred_element_type=jnp.float32) + b_attn_ref[...]
    q = c[:, 0 * D:1 * D].reshape(BT, S, D)
    k = c[:, 1 * D:2 * D].reshape(BT, S, D)
    v = c[:, 2 * D:3 * D].reshape(BT, S, D)

    w_proj = w_proj_ref[...]
    inv_sqrt_d = 1.0 / math.sqrt(dh)

    # combine_heads + c_proj fused: a @ W == sum_h a_h @ W[h*dh:(h+1)*dh, :]
    proj = jnp.zeros((R, D), jnp.float32)
    for h in range(H):                                   # static, small H
        qh = q[:, :, h * dh:(h + 1) * dh]                # [BT, S, dh]
        kh = k[:, :, h * dh:(h + 1) * dh]
        vh = v[:, :, h * dh:(h + 1) * dh]
        s = jnp.einsum('bqd,bkd->bqk', qh, kh,
                       preferred_element_type=jnp.float32) * inv_sqrt_d
        s = s + mask[h][None]                            # [BT, S, S]
        s = s - jnp.max(s, axis=-1, keepdims=True)
        p = jnp.exp(s)
        p = p * pl.reciprocal(jnp.sum(p, axis=-1, keepdims=True), approx=True)
        ah = jnp.einsum('bqk,bkd->bqd', p, vh,
                        preferred_element_type=jnp.float32)          # [BT, S, dh]
        proj = proj + jnp.dot(ah.reshape(R, dh), w_proj[h * dh:(h + 1) * dh, :],
                              preferred_element_type=jnp.float32)

    a = proj + b_proj_ref[...]

    # dropout == identity (inference)
    x = a + x

    # ---- LayerNorm 1 ----
    mu = jnp.mean(x, axis=-1, keepdims=True)
    var = jnp.mean((x - mu) ** 2, axis=-1, keepdims=True)
    x = (x - mu) * jax.lax.rsqrt(var + eps) * g1_ref[...] + beta1_ref[...]

    # ---- MLP ----
    hdn = jnp.dot(x, w1_ref[...], preferred_element_type=jnp.float32) + b1_ref[...]
    hdn = jax.nn.gelu(hdn, approximate=True)     # activation (dropout == identity)
    hdn = jnp.dot(hdn, w2_ref[...], preferred_element_type=jnp.float32) + b2_ref[...]
    x = x + hdn

    # ---- LayerNorm 2 ----
    mu = jnp.mean(x, axis=-1, keepdims=True)
    var = jnp.mean((x - mu) ** 2, axis=-1, keepdims=True)
    x = (x - mu) * jax.lax.rsqrt(var + eps) * g2_ref[...] + beta2_ref[...]

    o_ref[...] = x.reshape(BT, S, D).astype(o_ref.dtype)


def decoder_block(x, mask, p, *, heads, batch_tile=None):
    B, S, D = x.shape
    F = p["w1"].shape[1]
    H = heads
    dh = D // H
    assert mask.shape == (H, S, S)

    if batch_tile is None:
        # Fold as much batch as possible into one block (M = batch_tile*S for the
        # matmuls); when B allows, keep >=2 grid steps so v7x's 2 TCs both work.
        batch_tile = B // 2 if (B % 2 == 0 and B >= 4) else B
    assert B % batch_tile == 0
    n_blocks = B // batch_tile

    def rep(shape):
        # Replicated (grid-invariant) operand: weights, biases, gains, mask.
        return pl.BlockSpec(shape, lambda b: (0,) * len(shape))

    kernel = functools.partial(decoder_block_kernel, heads=heads)

    # Advisory cost estimate so XLA can schedule surrounding ops around the call.
    flops = int(2 * B * S * D * 3 * D            # c_attn
                + 2 * 2 * B * H * S * S * dh     # QK^T + PV
                + 2 * B * S * D * D              # c_proj
                + 2 * 2 * B * S * D * F)         # MLP
    transcendentals = int(B * H * S * S + B * S * F + 2 * B * S)
    bytes_accessed = int(4 * (2 * B * S * D + H * S * S
                              + D * 3 * D + 3 * D + D * D + D
                              + D * F + F + F * D + D + 4 * D))

    return pl.pallas_call(
        kernel,
        out_shape=jax.ShapeDtypeStruct((B, S, D), x.dtype),
        grid=(n_blocks,),
        in_specs=[
            pl.BlockSpec((batch_tile, S, D), lambda b: (b, 0, 0)),
            rep((H, S, S)),
            rep((D, 3 * D)), rep((1, 3 * D)),
            rep((D, D)), rep((1, D)),
            rep((D, F)), rep((1, F)),
            rep((F, D)), rep((1, D)),
            rep((1, D)), rep((1, D)),
            rep((1, D)), rep((1, D)),
        ],
        out_specs=pl.BlockSpec((batch_tile, S, D), lambda b: (b, 0, 0)),
        compiler_params=pltpu.CompilerParams(dimension_semantics=("parallel",)),
        cost_estimate=pl.CostEstimate(flops=flops,
                                      transcendentals=transcendentals,
                                      bytes_accessed=bytes_accessed),
    )(x, mask,
      p["w_attn"], p["b_attn"], p["w_proj"], p["b_proj"],
      p["w1"], p["b1"], p["w2"], p["b2"],
      p["g1"], p["beta1"], p["g2"], p["beta2"])


# ---------------- pure-JAX reference (mirrors the PyTorch forward) ----------------
def reference(x, mask, p, *, heads):
    B, S, D = x.shape
    dh = D // heads
    c = x @ p["w_attn"] + p["b_attn"][0]
    q, k, v = jnp.split(c, 3, axis=-1)

    def split_heads(t):
        return t.reshape(B, S, heads, dh).transpose(0, 2, 1, 3)

    q, k, v = split_heads(q), split_heads(k), split_heads(v)
    w = (q @ jnp.swapaxes(k, -1, -2)) / math.sqrt(dh) + mask[None]   # mask: [H,S,S]
    a = jax.nn.softmax(w, axis=-1) @ v
    a = a.transpose(0, 2, 1, 3).reshape(B, S, D)
    a = a @ p["w_proj"] + p["b_proj"][0]
    x = a + x

    def ln(t, g, b):
        mu = t.mean(-1, keepdims=True)
        var = ((t - mu) ** 2).mean(-1, keepdims=True)
        return (t - mu) / jnp.sqrt(var + 1e-5) * g[0] + b[0]

    x = ln(x, p["g1"], p["beta1"])
    h = jax.nn.gelu(x @ p["w1"] + p["b1"][0], approximate=True)
    h = h @ p["w2"] + p["b2"][0]
    return ln(x + h, p["g2"], p["beta2"])


def build_alibi_causal_mask(H, S, dtype=jnp.float32):
    # Per-head mask, identical for every batch element -> shape [H, S, S].
    slopes = jnp.array([2.0 ** (-8.0 * (i + 1) / H) for i in range(H)], dtype)
    pos = jnp.arange(S)
    rel = (pos[None, :] - pos[:, None]).astype(dtype)        # k - q
    alibi = slopes[:, None, None] * rel[None, :, :]          # [H, S, S]
    return jnp.where(rel[None] <= 0, alibi, jnp.asarray(-1e9, dtype))


if __name__ == "__main__":
    B, S, heads, D, F = 2, 8, 4, 32, 64   # batch, seq, heads, n_state, proj_forward

    key = jax.random.PRNGKey(0)
    keys = jax.random.split(key, 8)

    params = {
        "w_attn": 0.02 * jax.random.normal(keys[0], (D, 3 * D), jnp.float32),
        "b_attn": jnp.zeros((1, 3 * D), jnp.float32),
        "w_proj": 0.02 * jax.random.normal(keys[1], (D, D), jnp.float32),
        "b_proj": jnp.zeros((1, D), jnp.float32),
        "w1": 0.02 * jax.random.normal(keys[2], (D, F), jnp.float32),
        "b1": 0.02 * jax.random.normal(keys[3], (1, F), jnp.float32),
        "w2": 0.02 * jax.random.normal(keys[4], (F, D), jnp.float32),
        "b2": 0.02 * jax.random.normal(keys[5], (1, D), jnp.float32),
        "g1": jnp.ones((1, D), jnp.float32),
        "beta1": jnp.zeros((1, D), jnp.float32),
        "g2": jnp.ones((1, D), jnp.float32),
        "beta2": jnp.zeros((1, D), jnp.float32),
    }

    x = jax.random.normal(keys[6], (B, S, D), jnp.float32)
    mask = build_alibi_causal_mask(heads, S)

    out = decoder_block(x, mask, params, heads=heads)
    out = jax.block_until_ready(out)

    ref = reference(x, mask, params, heads=heads)
    assert out.shape == (B, S, D)
    # 2e-3 tolerance: the only approximation vs. the f32 reference is the EUP
    # approx reciprocal in the softmax denominator.
    assert jnp.allclose(out, ref, rtol=2e-3, atol=2e-3), "mismatch vs JAX reference"

    print("KERNEL_OK")
</pallas_src>

<mosaic_0001>
module attributes {stable_mosaic.version = 11 : i64} {
  func.func @decoder_block_kernel(%arg0: i32, %arg1: memref<2x8x32xf32, #tpu.memory_space<vmem>>, %arg2: memref<4x8x8xf32, #tpu.memory_space<vmem>>, %arg3: memref<32x96xf32, #tpu.memory_space<vmem>>, %arg4: memref<1x96xf32, #tpu.memory_space<vmem>>, %arg5: memref<32x32xf32, #tpu.memory_space<vmem>>, %arg6: memref<1x32xf32, #tpu.memory_space<vmem>>, %arg7: memref<32x64xf32, #tpu.memory_space<vmem>>, %arg8: memref<1x64xf32, #tpu.memory_space<vmem>>, %arg9: memref<64x32xf32, #tpu.memory_space<vmem>>, %arg10: memref<1x32xf32, #tpu.memory_space<vmem>>, %arg11: memref<1x32xf32, #tpu.memory_space<vmem>>, %arg12: memref<1x32xf32, #tpu.memory_space<vmem>>, %arg13: memref<1x32xf32, #tpu.memory_space<vmem>>, %arg14: memref<1x32xf32, #tpu.memory_space<vmem>>, %arg15: memref<2x8x32xf32, #tpu.memory_space<vmem>>) attributes {dimension_semantics = [#tpu.dimension_semantics<parallel>], iteration_bounds = array<i64: 1>, scalar_prefetch = 0 : i64, scratch_operands = 0 : i64, tpu.core_type = #tpu.core_type<tc>, window_params = [{transform_indices = @transform_0, window_bounds = array<i64: 2, 8, 32>}, {pipeline_mode = #tpu.pipeline_mode<synchronous>, transform_indices = @transform_1, window_bounds = array<i64: 4, 8, 8>}, {pipeline_mode = #tpu.pipeline_mode<synchronous>, transform_indices = @transform_2, window_bounds = array<i64: 32, 96>}, {pipeline_mode = #tpu.pipeline_mode<synchronous>, transform_indices = @transform_3, window_bounds = array<i64: 1, 96>}, {pipeline_mode = #tpu.pipeline_mode<synchronous>, transform_indices = @transform_4, window_bounds = array<i64: 32, 32>}, {pipeline_mode = #tpu.pipeline_mode<synchronous>, transform_indices = @transform_5, window_bounds = array<i64: 1, 32>}, {pipeline_mode = #tpu.pipeline_mode<synchronous>, transform_indices = @transform_6, window_bounds = array<i64: 32, 64>}, {pipeline_mode = #tpu.pipeline_mode<synchronous>, transform_indices = @transform_7, window_bounds = array<i64: 1, 64>}, {pipeline_mode = #tpu.pipeline_mode<synchronous>, transform_indices = @transform_8, window_bounds = array<i64: 64, 32>}, {pipeline_mode = #tpu.pipeline_mode<synchronous>, transform_indices = @transform_9, window_bounds = array<i64: 1, 32>}, {pipeline_mode = #tpu.pipeline_mode<synchronous>, transform_indices = @transform_10, window_bounds = array<i64: 1, 32>}, {pipeline_mode = #tpu.pipeline_mode<synchronous>, transform_indices = @transform_11, window_bounds = array<i64: 1, 32>}, {pipeline_mode = #tpu.pipeline_mode<synchronous>, transform_indices = @transform_12, window_bounds = array<i64: 1, 32>}, {pipeline_mode = #tpu.pipeline_mode<synchronous>, transform_indices = @transform_13, window_bounds = array<i64: 1, 32>}, {transform_indices = @transform_14, window_bounds = array<i64: 2, 8, 32>}]} {
    %c0 = arith.constant 0 : index
    %c0_0 = arith.constant 0 : index
    %c0_1 = arith.constant 0 : index
    %0 = vector.load %arg1[%c0, %c0_0, %c0_1] : memref<2x8x32xf32, #tpu.memory_space<vmem>>, vector<2x8x32xf32>
    %1 = vector.shape_cast %0 : vector<2x8x32xf32> to vector<16x32xf32>
    %c0_2 = arith.constant 0 : index
    %c0_3 = arith.constant 0 : index
    %c0_4 = arith.constant 0 : index
    %2 = vector.load %arg2[%c0_2, %c0_3, %c0_4] : memref<4x8x8xf32, #tpu.memory_space<vmem>>, vector<4x8x8xf32>
    %c0_5 = arith.constant 0 : index
    %c0_6 = arith.constant 0 : index
    %3 = vector.load %arg3[%c0_5, %c0_6] : memref<32x96xf32, #tpu.memory_space<vmem>>, vector<32x96xf32>
    %cst = arith.constant dense<0.000000e+00> : vector<16x96xf32>
    %4 = tpu.matmul %1, %3, %cst {dimension_numbers = #tpu.dot_dimension_numbers<[1], [0], [0], [1], [0, 0, 1, 1], [], []>} : vector<16x32xf32>, vector<32x96xf32>, vector<16x96xf32> -> vector<16x96xf32>
    %c0_7 = arith.constant 0 : index
    %c0_8 = arith.constant 0 : index
    %5 = vector.load %arg4[%c0_7, %c0_8] : memref<1x96xf32, #tpu.memory_space<vmem>>, vector<1x96xf32>
    %6 = vector.broadcast %5 : vector<1x96xf32> to vector<16x96xf32>
    %7 = arith.addf %4, %6 : vector<16x96xf32>
    %8 = vector.extract_strided_slice %7 {offsets = [0, 0], sizes = [16, 32], strides = [1, 1]} : vector<16x96xf32> to vector<16x32xf32>
    %9 = vector.shape_cast %8 : vector<16x32xf32> to vector<2x8x32xf32>
    %10 = vector.extract_strided_slice %7 {offsets = [0, 32], sizes = [16, 32], strides = [1, 1]} : vector<16x96xf32> to vector<16x32xf32>
    %11 = vector.shape_cast %10 : vector<16x32xf32> to vector<2x8x32xf32>
    %12 = vector.extract_strided_slice %7 {offsets = [0, 64], sizes = [16, 32], strides = [1, 1]} : vector<16x96xf32> to vector<16x32xf32>
    %13 = vector.shape_cast %12 : vector<16x32xf32> to vector<2x8x32xf32>
    %c0_9 = arith.constant 0 : index
    %c0_10 = arith.constant 0 : index
    %14 = vector.load %arg5[%c0_9, %c0_10] : memref<32x32xf32, #tpu.memory_space<vmem>>, vector<32x32xf32>
    %cst_11 = arith.constant 0.000000e+00 : f32
    %15 = vector.broadcast %cst_11 : f32 to vector<16x32xf32>
    %16 = vector.extract_strided_slice %9 {offsets = [0, 0, 0], sizes = [2, 8, 8], strides = [1, 1, 1]} : vector<2x8x32xf32> to vector<2x8x8xf32>
    %17 = vector.extract_strided_slice %11 {offsets = [0, 0, 0], sizes = [2, 8, 8], strides = [1, 1, 1]} : vector<2x8x32xf32> to vector<2x8x8xf32>
    %18 = vector.extract_strided_slice %13 {offsets = [0, 0, 0], sizes = [2, 8, 8], strides = [1, 1, 1]} : vector<2x8x32xf32> to vector<2x8x8xf32>
    "tpu.trace_start"() <{level = 10 : i32, message = "bqd,bkd->bqk"}> : () -> ()
    %cst_12 = arith.constant dense<0.000000e+00> : vector<2x8x8xf32>
    %19 = tpu.matmul %16, %17, %cst_12 {dimension_numbers = #tpu.dot_dimension_numbers<[2], [2], [1], [1], [0, 0, 0, 1, 1, 1], [0], [0]>} : vector<2x8x8xf32>, vector<2x8x8xf32>, vector<2x8x8xf32> -> vector<2x8x8xf32>
    "tpu.trace_stop"() : () -> ()
    %cst_13 = arith.constant 0.353553385 : f32
    %20 = vector.broadcast %cst_13 : f32 to vector<2x8x8xf32>
    %21 = arith.mulf %19, %20 : vector<2x8x8xf32>
    %22 = vector.extract_strided_slice %2 {offsets = [0, 0, 0], sizes = [1, 8, 8], strides = [1, 1, 1]} : vector<4x8x8xf32> to vector<1x8x8xf32>
    %23 = vector.shape_cast %22 : vector<1x8x8xf32> to vector<8x8xf32>
    %24 = vector.shape_cast %23 : vector<8x8xf32> to vector<1x8x8xf32>
    %25 = vector.broadcast %24 : vector<1x8x8xf32> to vector<2x8x8xf32>
    %26 = arith.addf %21, %25 : vector<2x8x8xf32>
    %cst_14 = arith.constant dense<0xFF800000> : vector<2x8xf32>
    %27 = vector.multi_reduction <maximumf>, %26, %cst_14 [2] : vector<2x8x8xf32> to vector<2x8xf32>
    %28 = vector.shape_cast %27 : vector<2x8xf32> to vector<2x8x1xf32>
    %29 = vector.broadcast %28 : vector<2x8x1xf32> to vector<2x8x8xf32>
    %30 = arith.subf %26, %29 : vector<2x8x8xf32>
    %31 = math.exp %30 : vector<2x8x8xf32>
    %cst_15 = arith.constant dense<0.000000e+00> : vector<2x8xf32>
    %32 = vector.multi_reduction <add>, %31, %cst_15 [2] : vector<2x8x8xf32> to vector<2x8xf32>
    %33 = vector.shape_cast %32 : vector<2x8xf32> to vector<2x8x1xf32>
    %34 = tpu.reciprocal %33 {approx = true} : vector<2x8x1xf32> -> vector<2x8x1xf32>
    %35 = vector.broadcast %34 : vector<2x8x1xf32> to vector<2x8x8xf32>
    %36 = arith.mulf %31, %35 : vector<2x8x8xf32>
    "tpu.trace_start"() <{level = 10 : i32, message = "bqk,bkd->bqd"}> : () -> ()
    %cst_16 = arith.constant dense<0.000000e+00> : vector<2x8x8xf32>
    %37 = tpu.matmul %36, %18, %cst_16 {dimension_numbers = #tpu.dot_dimension_numbers<[2], [1], [1], [2], [0, 0, 0, 1, 1, 2], [0], [0]>} : vector<2x8x8xf32>, vector<2x8x8xf32>, vector<2x8x8xf32> -> vector<2x8x8xf32>
    "tpu.trace_stop"() : () -> ()
    %38 = vector.shape_cast %37 : vector<2x8x8xf32> to vector<16x8xf32>
    %39 = vector.extract_strided_slice %14 {offsets = [0, 0], sizes = [8, 32], strides = [1, 1]} : vector<32x32xf32> to vector<8x32xf32>
    %cst_17 = arith.constant dense<0.000000e+00> : vector<16x32xf32>
    %40 = tpu.matmul %38, %39, %cst_17 {dimension_numbers = #tpu.dot_dimension_numbers<[1], [0], [0], [1], [0, 0, 1, 1], [], []>} : vector<16x8xf32>, vector<8x32xf32>, vector<16x32xf32> -> vector<16x32xf32>
    %41 = arith.addf %15, %40 : vector<16x32xf32>
    %42 = vector.extract_strided_slice %9 {offsets = [0, 0, 8], sizes = [2, 8, 8], strides = [1, 1, 1]} : vector<2x8x32xf32> to vector<2x8x8xf32>
    %43 = vector.extract_strided_slice %11 {offsets = [0, 0, 8], sizes = [2, 8, 8], strides = [1, 1, 1]} : vector<2x8x32xf32> to vector<2x8x8xf32>
    %44 = vector.extract_strided_slice %13 {offsets = [0, 0, 8], sizes = [2, 8, 8], strides = [1, 1, 1]} : vector<2x8x32xf32> to vector<2x8x8xf32>
    "tpu.trace_start"() <{level = 10 : i32, message = "bqd,bkd->bqk"}> : () -> ()
    %cst_18 = arith.constant dense<0.000000e+00> : vector<2x8x8xf32>
    %45 = tpu.matmul %42, %43, %cst_18 {dimension_numbers = #tpu.dot_dimension_numbers<[2], [2], [1], [1], [0, 0, 0, 1, 1, 1], [0], [0]>} : vector<2x8x8xf32>, vector<2x8x8xf32>, vector<2x8x8xf32> -> vector<2x8x8xf32>
    "tpu.trace_stop"() : () -> ()
    %cst_19 = arith.constant 0.353553385 : f32
    %46 = vector.broadcast %cst_19 : f32 to vector<2x8x8xf32>
    %47 = arith.mulf %45, %46 : vector<2x8x8xf32>
    %48 = vector.extract_strided_slice %2 {offsets = [1, 0, 0], sizes = [1, 8, 8], strides = [1, 1, 1]} : vector<4x8x8xf32> to vector<1x8x8xf32>
    %49 = vector.shape_cast %48 : vector<1x8x8xf32> to vector<8x8xf32>
    %50 = vector.shape_cast %49 : vector<8x8xf32> to vector<1x8x8xf32>
    %51 = vector.broadcast %50 : vector<1x8x8xf32> to vector<2x8x8xf32>
    %52 = arith.addf %47, %51 : vector<2x8x8xf32>
    %cst_20 = arith.constant dense<0xFF800000> : vector<2x8xf32>
    %53 = vector.multi_reduction <maximumf>, %52, %cst_20 [2] : vector<2x8x8xf32> to vector<2x8xf32>
    %54 = vector.shape_cast %53 : vector<2x8xf32> to vector<2x8x1xf32>
    %55 = vector.broadcast %54 : vector<2x8x1xf32> to vector<2x8x8xf32>
    %56 = arith.subf %52, %55 : vector<2x8x8xf32>
    %57 = math.exp %56 : vector<2x8x8xf32>
    %cst_21 = arith.constant dense<0.000000e+00> : vector<2x8xf32>
    %58 = vector.multi_reduction <add>, %57, %cst_21 [2] : vector<2x8x8xf32> to vector<2x8xf32>
    %59 = vector.shape_cast %58 : vector<2x8xf32> to vector<2x8x1xf32>
    %60 = tpu.reciprocal %59 {approx = true} : vector<2x8x1xf32> -> vector<2x8x1xf32>
    %61 = vector.broadcast %60 : vector<2x8x1xf32> to vector<2x8x8xf32>
    %62 = arith.mulf %57, %61 : vector<2x8x8xf32>
    "tpu.trace_start"() <{level = 10 : i32, message = "bqk,bkd->bqd"}> : () -> ()
    %cst_22 = arith.constant dense<0.000000e+00> : vector<2x8x8xf32>
    %63 = tpu.matmul %62, %44, %cst_22 {dimension_numbers = #tpu.dot_dimension_numbers<[2], [1], [1], [2], [0, 0, 0, 1, 1, 2], [0], [0]>} : vector<2x8x8xf32>, vector<2x8x8xf32>, vector<2x8x8xf32> -> vector<2x8x8xf32>
    "tpu.trace_stop"() : () -> ()
    %64 = vector.shape_cast %63 : vector<2x8x8xf32> to vector<16x8xf32>
    %65 = vector.extract_strided_slice %14 {offsets = [8, 0], sizes = [8, 32], strides = [1, 1]} : vector<32x32xf32> to vector<8x32xf32>
    %cst_23 = arith.constant dense<0.000000e+00> : vector<16x32xf32>
    %66 = tpu.matmul %64, %65, %cst_23 {dimension_numbers = #tpu.dot_dimension_numbers<[1], [0], [0], [1], [0, 0, 1, 1], [], []>} : vector<16x8xf32>, vector<8x32xf32>, vector<16x32xf32> -> vector<16x32xf32>
    %67 = arith.addf %41, %66 : vector<16x32xf32>
    %68 = vector.extract_strided_slice %9 {offsets = [0, 0, 16], sizes = [2, 8, 8], strides = [1, 1, 1]} : vector<2x8x32xf32> to vector<2x8x8xf32>
    %69 = vector.extract_strided_slice %11 {offsets = [0, 0, 16], sizes = [2, 8, 8], strides = [1, 1, 1]} : vector<2x8x32xf32> to vector<2x8x8xf32>
    %70 = vector.extract_strided_slice %13 {offsets = [0, 0, 16], sizes = [2, 8, 8], strides = [1, 1, 1]} : vector<2x8x32xf32> to vector<2x8x8xf32>
    "tpu.trace_start"() <{level = 10 : i32, message = "bqd,bkd->bqk"}> : () -> ()
    %cst_24 = arith.constant dense<0.000000e+00> : vector<2x8x8xf32>
    %71 = tpu.matmul %68, %69, %cst_24 {dimension_numbers = #tpu.dot_dimension_numbers<[2], [2], [1], [1], [0, 0, 0, 1, 1, 1], [0], [0]>} : vector<2x8x8xf32>, vector<2x8x8xf32>, vector<2x8x8xf32> -> vector<2x8x8xf32>
    "tpu.trace_stop"() : () -> ()
    %cst_25 = arith.constant 0.353553385 : f32
    %72 = vector.broadcast %cst_25 : f32 to vector<2x8x8xf32>
    %73 = arith.mulf %71, %72 : vector<2x8x8xf32>
    %74 = vector.extract_strided_slice %2 {offsets = [2, 0, 0], sizes = [1, 8, 8], strides = [1, 1, 1]} : vector<4x8x8xf32> to vector<1x8x8xf32>
    %75 = vector.shape_cast %74 : vector<1x8x8xf32> to vector<8x8xf32>
    %76 = vector.shape_cast %75 : vector<8x8xf32> to vector<1x8x8xf32>
    %77 = vector.broadcast %76 : vector<1x8x8xf32> to vector<2x8x8xf32>
    %78 = arith.addf %73, %77 : vector<2x8x8xf32>
    %cst_26 = arith.constant dense<0xFF800000> : vector<2x8xf32>
    %79 = vector.multi_reduction <maximumf>, %78, %cst_26 [2] : vector<2x8x8xf32> to vector<2x8xf32>
    %80 = vector.shape_cast %79 : vector<2x8xf32> to vector<2x8x1xf32>
    %81 = vector.broadcast %80 : vector<2x8x1xf32> to vector<2x8x8xf32>
    %82 = arith.subf %78, %81 : vector<2x8x8xf32>
    %83 = math.exp %82 : vector<2x8x8xf32>
    %cst_27 = arith.constant dense<0.000000e+00> : vector<2x8xf32>
    %84 = vector.multi_reduction <add>, %83, %cst_27 [2] : vector<2x8x8xf32> to vector<2x8xf32>
    %85 = vector.shape_cast %84 : vector<2x8xf32> to vector<2x8x1xf32>
    %86 = tpu.reciprocal %85 {approx = true} : vector<2x8x1xf32> -> vector<2x8x1xf32>
    %87 = vector.broadcast %86 : vector<2x8x1xf32> to vector<2x8x8xf32>
    %88 = arith.mulf %83, %87 : vector<2x8x8xf32>
    "tpu.trace_start"() <{level = 10 : i32, message = "bqk,bkd->bqd"}> : () -> ()
    %cst_28 = arith.constant dense<0.000000e+00> : vector<2x8x8xf32>
    %89 = tpu.matmul %88, %70, %cst_28 {dimension_numbers = #tpu.dot_dimension_numbers<[2], [1], [1], [2], [0, 0, 0, 1, 1, 2], [0], [0]>} : vector<2x8x8xf32>, vector<2x8x8xf32>, vector<2x8x8xf32> -> vector<2x8x8xf32>
    "tpu.trace_stop"() : () -> ()
    %90 = vector.shape_cast %89 : vector<2x8x8xf32> to vector<16x8xf32>
    %91 = vector.extract_strided_slice %14 {offsets = [16, 0], sizes = [8, 32], strides = [1, 1]} : vector<32x32xf32> to vector<8x32xf32>
    %cst_29 = arith.constant dense<0.000000e+00> : vector<16x32xf32>
    %92 = tpu.matmul %90, %91, %cst_29 {dimension_numbers = #tpu.dot_dimension_numbers<[1], [0], [0], [1], [0, 0, 1, 1], [], []>} : vector<16x8xf32>, vector<8x32xf32>, vector<16x32xf32> -> vector<16x32xf32>
    %93 = arith.addf %67, %92 : vector<16x32xf32>
    %94 = vector.extract_strided_slice %9 {offsets = [0, 0, 24], sizes = [2, 8, 8], strides = [1, 1, 1]} : vector<2x8x32xf32> to vector<2x8x8xf32>
    %95 = vector.extract_strided_slice %11 {offsets = [0, 0, 24], sizes = [2, 8, 8], strides = [1, 1, 1]} : vector<2x8x32xf32> to vector<2x8x8xf32>
    %96 = vector.extract_strided_slice %13 {offsets = [0, 0, 24], sizes = [2, 8, 8], strides = [1, 1, 1]} : vector<2x8x32xf32> to vector<2x8x8xf32>
    "tpu.trace_start"() <{level = 10 : i32, message = "bqd,bkd->bqk"}> : () -> ()
    %cst_30 = arith.constant dense<0.000000e+00> : vector<2x8x8xf32>
    %97 = tpu.matmul %94, %95, %cst_30 {dimension_numbers = #tpu.dot_dimension_numbers<[2], [2], [1], [1], [0, 0, 0, 1, 1, 1], [0], [0]>} : vector<2x8x8xf32>, vector<2x8x8xf32>, vector<2x8x8xf32> -> vector<2x8x8xf32>
    "tpu.trace_stop"() : () -> ()
    %cst_31 = arith.constant 0.353553385 : f32
    %98 = vector.broadcast %cst_31 : f32 to vector<2x8x8xf32>
    %99 = arith.mulf %97, %98 : vector<2x8x8xf32>
    %100 = vector.extract_strided_slice %2 {offsets = [3, 0, 0], sizes = [1, 8, 8], strides = [1, 1, 1]} : vector<4x8x8xf32> to vector<1x8x8xf32>
    %101 = vector.shape_cast %100 : vector<1x8x8xf32> to vector<8x8xf32>
    %102 = vector.shape_cast %101 : vector<8x8xf32> to vector<1x8x8xf32>
    %103 = vector.broadcast %102 : vector<1x8x8xf32> to vector<2x8x8xf32>
    %104 = arith.addf %99, %103 : vector<2x8x8xf32>
    %cst_32 = arith.constant dense<0xFF800000> : vector<2x8xf32>
    %105 = vector.multi_reduction <maximumf>, %104, %cst_32 [2] : vector<2x8x8xf32> to vector<2x8xf32>
    %106 = vector.shape_cast %105 : vector<2x8xf32> to vector<2x8x1xf32>
    %107 = vector.broadcast %106 : vector<2x8x1xf32> to vector<2x8x8xf32>
    %108 = arith.subf %104, %107 : vector<2x8x8xf32>
    %109 = math.exp %108 : vector<2x8x8xf32>
    %cst_33 = arith.constant dense<0.000000e+00> : vector<2x8xf32>
    %110 = vector.multi_reduction <add>, %109, %cst_33 [2] : vector<2x8x8xf32> to vector<2x8xf32>
    %111 = vector.shape_cast %110 : vector<2x8xf32> to vector<2x8x1xf32>
    %112 = tpu.reciprocal %111 {approx = true} : vector<2x8x1xf32> -> vector<2x8x1xf32>
    %113 = vector.broadcast %112 : vector<2x8x1xf32> to vector<2x8x8xf32>
    %114 = arith.mulf %109, %113 : vector<2x8x8xf32>
    "tpu.trace_start"() <{level = 10 : i32, message = "bqk,bkd->bqd"}> : () -> ()
    %cst_34 = arith.constant dense<0.000000e+00> : vector<2x8x8xf32>
    %115 = tpu.matmul %114, %96, %cst_34 {dimension_numbers = #tpu.dot_dimension_numbers<[2], [1], [1], [2], [0, 0, 0, 1, 1, 2], [0], [0]>} : vector<2x8x8xf32>, vector<2x8x8xf32>, vector<2x8x8xf32> -> vector<2x8x8xf32>
    "tpu.trace_stop"() : () -> ()
    %116 = vector.shape_cast %115 : vector<2x8x8xf32> to vector<16x8xf32>
    %117 = vector.extract_strided_slice %14 {offsets = [24, 0], sizes = [8, 32], strides = [1, 1]} : vector<32x32xf32> to vector<8x32xf32>
    %cst_35 = arith.constant dense<0.000000e+00> : vector<16x32xf32>
    %118 = tpu.matmul %116, %117, %cst_35 {dimension_numbers = #tpu.dot_dimension_numbers<[1], [0], [0], [1], [0, 0, 1, 1], [], []>} : vector<16x8xf32>, vector<8x32xf32>, vector<16x32xf32> -> vector<16x32xf32>
    %119 = arith.addf %93, %118 : vector<16x32xf32>
    %c0_36 = arith.constant 0 : index
    %c0_37 = arith.constant 0 : index
    %120 = vector.load %arg6[%c0_36, %c0_37] : memref<1x32xf32, #tpu.memory_space<vmem>>, vector<1x32xf32>
    %121 = vector.broadcast %120 : vector<1x32xf32> to vector<16x32xf32>
    %122 = arith.addf %119, %121 : vector<16x32xf32>
    %123 = arith.addf %122, %1 : vector<16x32xf32>
    %cst_38 = arith.constant dense<0.000000e+00> : vector<16xf32>
    %124 = vector.multi_reduction <add>, %123, %cst_38 [1] : vector<16x32xf32> to vector<16xf32>
    %125 = vector.shape_cast %124 : vector<16xf32> to vector<16x1xf32>
    %cst_39 = arith.constant 3.200000e+01 : f32
    %126 = vector.broadcast %cst_39 : f32 to vector<16x1xf32>
    %127 = arith.divf %125, %126 : vector<16x1xf32>
    %128 = vector.broadcast %127 : vector<16x1xf32> to vector<16x32xf32>
    %129 = arith.subf %123, %128 : vector<16x32xf32>
    %130 = arith.mulf %129, %129 : vector<16x32xf32>
    %cst_40 = arith.constant dense<0.000000e+00> : vector<16xf32>
    %131 = vector.multi_reduction <add>, %130, %cst_40 [1] : vector<16x32xf32> to vector<16xf32>
    %132 = vector.shape_cast %131 : vector<16xf32> to vector<16x1xf32>
    %cst_41 = arith.constant 3.200000e+01 : f32
    %133 = vector.broadcast %cst_41 : f32 to vector<16x1xf32>
    %134 = arith.divf %132, %133 : vector<16x1xf32>
    %135 = vector.broadcast %127 : vector<16x1xf32> to vector<16x32xf32>
    %136 = arith.subf %123, %135 : vector<16x32xf32>
    %cst_42 = arith.constant 9.99999974E-6 : f32
    %137 = vector.broadcast %cst_42 : f32 to vector<16x1xf32>
    %138 = arith.addf %134, %137 : vector<16x1xf32>
    %139 = math.rsqrt %138 : vector<16x1xf32>
    %140 = vector.broadcast %139 : vector<16x1xf32> to vector<16x32xf32>
    %141 = arith.mulf %136, %140 : vector<16x32xf32>
    %c0_43 = arith.constant 0 : index
    %c0_44 = arith.constant 0 : index
    %142 = vector.load %arg11[%c0_43, %c0_44] : memref<1x32xf32, #tpu.memory_space<vmem>>, vector<1x32xf32>
    %143 = vector.broadcast %142 : vector<1x32xf32> to vector<16x32xf32>
    %144 = arith.mulf %141, %143 : vector<16x32xf32>
    %c0_45 = arith.constant 0 : index
    %c0_46 = arith.constant 0 : index
    %145 = vector.load %arg12[%c0_45, %c0_46] : memref<1x32xf32, #tpu.memory_space<vmem>>, vector<1x32xf32>
    %146 = vector.broadcast %145 : vector<1x32xf32> to vector<16x32xf32>
    %147 = arith.addf %144, %146 : vector<16x32xf32>
    %c0_47 = arith.constant 0 : index
    %c0_48 = arith.constant 0 : index
    %148 = vector.load %arg7[%c0_47, %c0_48] : memref<32x64xf32, #tpu.memory_space<vmem>>, vector<32x64xf32>
    %cst_49 = arith.constant dense<0.000000e+00> : vector<16x64xf32>
    %149 = tpu.matmul %147, %148, %cst_49 {dimension_numbers = #tpu.dot_dimension_numbers<[1], [0], [0], [1], [0, 0, 1, 1], [], []>} : vector<16x32xf32>, vector<32x64xf32>, vector<16x64xf32> -> vector<16x64xf32>
    %c0_50 = arith.constant 0 : index
    %c0_51 = arith.constant 0 : index
    %150 = vector.load %arg8[%c0_50, %c0_51] : memref<1x64xf32, #tpu.memory_space<vmem>>, vector<1x64xf32>
    %151 = vector.broadcast %150 : vector<1x64xf32> to vector<16x64xf32>
    %152 = arith.addf %149, %151 : vector<16x64xf32>
    %153 = arith.mulf %152, %152 : vector<16x64xf32>
    %154 = arith.mulf %152, %153 : vector<16x64xf32>
    %cst_52 = arith.constant 4.471500e-02 : f32
    %155 = vector.broadcast %cst_52 : f32 to vector<16x64xf32>
    %156 = arith.mulf %155, %154 : vector<16x64xf32>
    %157 = arith.addf %152, %156 : vector<16x64xf32>
    %cst_53 = arith.constant 0.797884583 : f32
    %158 = vector.broadcast %cst_53 : f32 to vector<16x64xf32>
    %159 = arith.mulf %158, %157 : vector<16x64xf32>
    %160 = math.tanh %159 : vector<16x64xf32>
    %cst_54 = arith.constant 1.000000e+00 : f32
    %161 = vector.broadcast %cst_54 : f32 to vector<16x64xf32>
    %162 = arith.addf %161, %160 : vector<16x64xf32>
    %cst_55 = arith.constant 5.000000e-01 : f32
    %163 = vector.broadcast %cst_55 : f32 to vector<16x64xf32>
    %164 = arith.mulf %163, %162 : vector<16x64xf32>
    %165 = arith.mulf %152, %164 : vector<16x64xf32>
    %c0_56 = arith.constant 0 : index
    %c0_57 = arith.constant 0 : index
    %166 = vector.load %arg9[%c0_56, %c0_57] : memref<64x32xf32, #tpu.memory_space<vmem>>, vector<64x32xf32>
    %cst_58 = arith.constant dense<0.000000e+00> : vector<16x32xf32>
    %167 = tpu.matmul %165, %166, %cst_58 {dimension_numbers = #tpu.dot_dimension_numbers<[1], [0], [0], [1], [0, 0, 1, 1], [], []>} : vector<16x64xf32>, vector<64x32xf32>, vector<16x32xf32> -> vector<16x32xf32>
    %c0_59 = arith.constant 0 : index
    %c0_60 = arith.constant 0 : index
    %168 = vector.load %arg10[%c0_59, %c0_60] : memref<1x32xf32, #tpu.memory_space<vmem>>, vector<1x32xf32>
    %169 = vector.broadcast %168 : vector<1x32xf32> to vector<16x32xf32>
    %170 = arith.addf %167, %169 : vector<16x32xf32>
    %171 = arith.addf %147, %170 : vector<16x32xf32>
    %cst_61 = arith.constant dense<0.000000e+00> : vector<16xf32>
    %172 = vector.multi_reduction <add>, %171, %cst_61 [1] : vector<16x32xf32> to vector<16xf32>
    %173 = vector.shape_cast %172 : vector<16xf32> to vector<16x1xf32>
    %cst_62 = arith.constant 3.200000e+01 : f32
    %174 = vector.broadcast %cst_62 : f32 to vector<16x1xf32>
    %175 = arith.divf %173, %174 : vector<16x1xf32>
    %176 = vector.broadcast %175 : vector<16x1xf32> to vector<16x32xf32>
    %177 = arith.subf %171, %176 : vector<16x32xf32>
    %178 = arith.mulf %177, %177 : vector<16x32xf32>
    %cst_63 = arith.constant dense<0.000000e+00> : vector<16xf32>
    %179 = vector.multi_reduction <add>, %178, %cst_63 [1] : vector<16x32xf32> to vector<16xf32>
    %180 = vector.shape_cast %179 : vector<16xf32> to vector<16x1xf32>
    %cst_64 = arith.constant 3.200000e+01 : f32
    %181 = vector.broadcast %cst_64 : f32 to vector<16x1xf32>
    %182 = arith.divf %180, %181 : vector<16x1xf32>
    %183 = vector.broadcast %175 : vector<16x1xf32> to vector<16x32xf32>
    %184 = arith.subf %171, %183 : vector<16x32xf32>
    %cst_65 = arith.constant 9.99999974E-6 : f32
    %185 = vector.broadcast %cst_65 : f32 to vector<16x1xf32>
    %186 = arith.addf %182, %185 : vector<16x1xf32>
    %187 = math.rsqrt %186 : vector<16x1xf32>
    %188 = vector.broadcast %187 : vector<16x1xf32> to vector<16x32xf32>
    %189 = arith.mulf %184, %188 : vector<16x32xf32>
    %c0_66 = arith.constant 0 : index
    %c0_67 = arith.constant 0 : index
    %190 = vector.load %arg13[%c0_66, %c0_67] : memref<1x32xf32, #tpu.memory_space<vmem>>, vector<1x32xf32>
    %191 = vector.broadcast %190 : vector<1x32xf32> to vector<16x32xf32>
    %192 = arith.mulf %189, %191 : vector<16x32xf32>
    %c0_68 = arith.constant 0 : index
    %c0_69 = arith.constant 0 : index
    %193 = vector.load %arg14[%c0_68, %c0_69] : memref<1x32xf32, #tpu.memory_space<vmem>>, vector<1x32xf32>
    %194 = vector.broadcast %193 : vector<1x32xf32> to vector<16x32xf32>
    %195 = arith.addf %192, %194 : vector<16x32xf32>
    %196 = vector.shape_cast %195 : vector<16x32xf32> to vector<2x8x32xf32>
    %c0_70 = arith.constant 0 : index
    %c0_71 = arith.constant 0 : index
    %c0_72 = arith.constant 0 : index
    %197 = vector.load %arg15[%c0_70, %c0_71, %c0_72] : memref<2x8x32xf32, #tpu.memory_space<vmem>>, vector<2x8x32xf32>
    tpu.vector_store %arg15[%c0_70, %c0_71, %c0_72], %196 {strides = array<i32>} : memref<2x8x32xf32, #tpu.memory_space<vmem>>, vector<2x8x32xf32>,
    return
  }
  func.func @transform_0(%arg0: i32) -> (i32, i32, i32) {
    %c0_i32 = arith.constant 0 : i32
    %c0_i32_0 = arith.constant 0 : i32
    %c0_i32_1 = arith.constant 0 : i32
    return %arg0, %c0_i32, %c0_i32_0 : i32, i32, i32
  }
  func.func @transform_1(%arg0: i32) -> (i32, i32, i32) {
    %c0_i32 = arith.constant 0 : i32
    %c0_i32_0 = arith.constant 0 : i32
    %c0_i32_1 = arith.constant 0 : i32
    %c0_i32_2 = arith.constant 0 : i32
    return %c0_i32, %c0_i32_0, %c0_i32_1 : i32, i32, i32
  }
  func.func @transform_2(%arg0: i32) -> (i32, i32) {
    %c0_i32 = arith.constant 0 : i32
    %c0_i32_0 = arith.constant 0 : i32
    %c0_i32_1 = arith.constant 0 : i32
    return %c0_i32, %c0_i32_0 : i32, i32
  }
  func.func @transform_3(%arg0: i32) -> (i32, i32) {
    %c0_i32 = arith.constant 0 : i32
    %c0_i32_0 = arith.constant 0 : i32
    %c0_i32_1 = arith.constant 0 : i32
    return %c0_i32, %c0_i32_0 : i32, i32
  }
  func.func @transform_4(%arg0: i32) -> (i32, i32) {
    %c0_i32 = arith.constant 0 : i32
    %c0_i32_0 = arith.constant 0 : i32
    %c0_i32_1 = arith.constant 0 : i32
    return %c0_i32, %c0_i32_0 : i32, i32
  }
  func.func @transform_5(%arg0: i32) -> (i32, i32) {
    %c0_i32 = arith.constant 0 : i32
    %c0_i32_0 = arith.constant 0 : i32
    %c0_i32_1 = arith.constant 0 : i32
    return %c0_i32, %c0_i32_0 : i32, i32
  }
  func.func @transform_6(%arg0: i32) -> (i32, i32) {
    %c0_i32 = arith.constant 0 : i32
    %c0_i32_0 = arith.constant 0 : i32
    %c0_i32_1 = arith.constant 0 : i32
    return %c0_i32, %c0_i32_0 : i32, i32
  }
  func.func @transform_7(%arg0: i32) -> (i32, i32) {
    %c0_i32 = arith.constant 0 : i32
    %c0_i32_0 = arith.constant 0 : i32
    %c0_i32_1 = arith.constant 0 : i32
    return %c0_i32, %c0_i32_0 : i32, i32
  }
  func.func @transform_8(%arg0: i32) -> (i32, i32) {
    %c0_i32 = arith.constant 0 : i32
    %c0_i32_0 = arith.constant 0 : i32
    %c0_i32_1 = arith.constant 0 : i32
    return %c0_i32, %c0_i32_0 : i32, i32
  }
  func.func @transform_9(%arg0: i32) -> (i32, i32) {
    %c0_i32 = arith.constant 0 : i32
    %c0_i32_0 = arith.constant 0 : i32
    %c0_i32_1 = arith.constant 0 : i32
    return %c0_i32, %c0_i32_0 : i32, i32
  }
  func.func @transform_10(%arg0: i32) -> (i32, i32) {
    %c0_i32 = arith.constant 0 : i32
    %c0_i32_0 = arith.constant 0 : i32
    %c0_i32_1 = arith.constant 0 : i32
    return %c0_i32, %c0_i32_0 : i32, i32
  }
  func.func @transform_11(%arg0: i32) -> (i32, i32) {
    %c0_i32 = arith.constant 0 : i32
    %c0_i32_0 = arith.constant 0 : i32
    %c0_i32_1 = arith.constant 0 : i32
    return %c0_i32, %c0_i32_0 : i32, i32
  }
  func.func @transform_12(%arg0: i32) -> (i32, i32) {
    %c0_i32 = arith.constant 0 : i32
    %c0_i32_0 = arith.constant 0 : i32
    %c0_i32_1 = arith.constant 0 : i32
    return %c0_i32, %c0_i32_0 : i32, i32
  }
  func.func @transform_13(%arg0: i32) -> (i32, i32) {
    %c0_i32 = arith.constant 0 : i32
    %c0_i32_0 = arith.constant 0 : i32
    %c0_i32_1 = arith.constant 0 : i32
    return %c0_i32, %c0_i32_0 : i32, i32
  }
  func.func @transform_14(%arg0: i32) -> (i32, i32, i32) {
    %c0_i32 = arith.constant 0 : i32
    %c0_i32_0 = arith.constant 0 : i32
    %c0_i32_1 = arith.constant 0 : i32
    return %arg0, %c0_i32, %c0_i32_0 : i32, i32, i32
  }
}

</mosaic_0001>

<bundles_post_ra>
// kernel: tpu_custom_call.1
= control target key start
LH: loop header
LB: loop body
LE: loop exit
PB: predicated region body
PF: predicated region fallthrough
CT: control target
= control target key end

     0   :  { %19 = vsyncpa [#allocation3], 0  ;;  %s1540_s0 = inlined_call_operand.hbm [shape: f32[2,8,32], index: 0, kind: input, shape index: {}]   ;;  %s1541_s1 = inlined_call_operand.vmem [shape: f32[4,8,8], index: 1, kind: input, shape index: {}]   ;;  %s1542_s2 = inlined_call_operand.vmem [shape: f32[32,96], index: 2, kind: input, shape index: {}]   ;;  %s1543_s3 = inlined_call_operand.vmem [shape: f32[1,96], index: 3, kind: input, shape index: {}]   ;;  %s1544_s4 = inlined_call_operand.vmem [shape: f32[32,32], index: 4, kind: input, shape index: {}]   ;;  %s1545_s5 = inlined_call_operand.vmem [shape: f32[1,32], index: 5, kind: input, shape index: {}]   ;;  %s1546_s6 = inlined_call_operand.hbm [shape: f32[32,64], index: 6, kind: input, shape index: {}]   ;;  %s1547_s7 = inlined_call_operand.vmem [shape: f32[1,64], index: 7, kind: input, shape index: {}]   ;;  %s1548_s8 = inlined_call_operand.vmem [shape: f32[64,32], index: 8, kind: input, shape index: {}]   ;;  %s1549_s9 = inlined_call_operand.vmem [shape: f32[1,32], index: 9, kind: input, shape index: {}]   ;;  %s1550_s10 = inlined_call_operand.vmem [shape: f32[1,32], index: 10, kind: input, shape index: {}]   ;;  %s1551_s11 = inlined_call_operand.vmem [shape: f32[1,32], index: 11, kind: input, shape index: {}]   ;;  %s1552_s12 = inlined_call_operand.vmem [shape: f32[1,32], index: 12, kind: input, shape index: {}]   ;;  %s1553_s13 = inlined_call_operand.vmem [shape: f32[1,32], index: 13, kind: input, shape index: {}]   ;;  %s1554_s14 = inlined_call_operand.hbm [shape: f32[2,8,32], index: 14, kind: output, shape index: {}]  }
   0x1   :  { %20 = vsyncpa [#allocation6], 0 }
   0x2   :  { %21 = vsyncpa [#allocation4], 0  ;;  %s26_s15 = sshll.u32 %s1540_s0, 4  ;;  %s1218_s16 = smov [#allocation2]   ;;  %s27_s15 = int_to_ptr.hbm [resolvable:$true] %s26_s15 }
   0x3   :  { %s28_s17 = sshll.u32 %s1218_s16, 4  ;;  %s49_s20 = sshll.u32 %s1546_s6, 4  ;;  %s29_s17 = int_to_ptr.vmem [resolvable:$true] %s28_s17  ;;  %s50_s20 = int_to_ptr.hbm [resolvable:$true] %s49_s20 }
   0x4   :  { %s1219_s21 = smov 128   ;;  %s1220_s22 = smov 8  }
   0x5   :  { %34 = dma.hbm_to_vmem [thread:$0]  %s27_s15, 256, %s29_s17, [#allocation3], %s1219_s21, %s1219_s21, %s1220_s22  }
   0x6   :  { %s1221_s23 = smov [#allocation5]  }
   0x7   :  { %s51_s24 = sshll.u32 %s1221_s23, 4  ;;  %s52_s24 = int_to_ptr.vmem [resolvable:$true] %s51_s24 }
   0x8   :  { %57 = dma.hbm_to_vmem [thread:$0]  %s50_s20, 512, %s52_s24, [#allocation6], %s1219_s21, %s1219_s21, %s1220_s22  }
   0x9   :  { %1212 = dma.done.wait [#allocation3], 256  }
   0xa   :  { %1213 = vsyncadd [#allocation3], 4294967040 }
   0xb   :  { %1214 = dma.done.wait [#allocation6], 512  }
   0xc   :  { %1215 = vsyncadd [#allocation6], 4294966784  ;;  %v89_v0 = vld [vmem:[%s1542_s2 + $0x18] sm:$0xff]  ;;  %v88_v1 = vld [vmem:[%s1542_s2 + $0x10] sm:$0xff]  ;;  %vm94_vm0 = vcmask 261120   ;;  %s1223_s17 = smov 96  }
   0xd   :  { %113 = vmatpush.msra.mxu0 %v89_v0  ;;  %v87_v2 = vld [vmem:[%s1542_s2 + $0x8] sm:$0xff]  ;;  %v86_v3 = vld [vmem:[%s1542_s2] sm:$0xff]  ;;  %s1222_s2 = smov 88   ;;  %s1224_s18 = smov 120   ;;  %vm131_vm1 = vcmask 64512   ;;  %vm921_vm9 = vcmask 523264  }
   0xe   :  { %v1334_v4 = vld [vmem:[#allocation2] sm:$0xff]  ;;  %v1338_v5 = vld [vmem:[#allocation2 + $0x8] sm:$0xff]  ;;  %s1225_s24 = smov 64   ;;  %s1226_s0 = smov 80  }
   0xf   :  { %114 = vmatpush.msra.mxu0 %v88_v1  ;;  %v1086_v6 = vld [vmem:[%s1543_s3] ss:$0 sm:$0xff]  ;;  %v1371_v22 = vld [vmem:[%s1541_s1 + $0x8] sm:$0xff]  ;;  %s1227_s6 = smov 56   ;;  %s1228_s25 = smov 112  }
  0x10   :  { %v82_v17 = vld [vmem:[%s1541_s1] sm:$0xff]  ;;  %s1229_s26 = smov 48   ;;  %s1230_s27 = smov 72   ;;  %v125_v1 = vld [vmem:[%s1544_s4 + $0x8] sm:$0xff] }
  0x11   :  { %115 = vmatpush.msra.mxu0 %v87_v2  ;;  %s1231_s28 = smov 104   ;;  %v124_v0 = vld [vmem:[%s1544_s4] sm:$0xff] }
  0x13   :  { %116 = vmatpush.msra.mxu0 %v86_v3 }
  0x14   :  { %1031 = vmatmul.msk.f32.vlgmr.msra.gmra.mxu0 %vm94_vm0, %v1334_v4 }
  0x1c   :  { %1032 = vmatmul.msk.f32.gmra.mxu0 %vm94_vm0, %v1338_v5 }
  0x91   :  { %v118_v7 = vpop.f32.mrf.mxu0 }
  0x92   :  { %v1345_v8 = vadd.f32 %v1086_v6, %v118_v7 }
  0x94   :  { %263 = vrot.lane.b32.xlu1 %v1345_v8, %s1222_s2  ;;  %129 = vrot.lane.b32.xlu0 %v1345_v8, %s1223_s17 }
  0x99   :  { %v121_v9 = vpop.f32.mrf.mxu0 }
  0x9a   :  { %v1349_v10 = vadd.f32 %v1086_v6, %v121_v9 }
  0x9c   :  { %261 = vrot.lane.b32.xlu1 %v1345_v8, %s1224_s18  ;;  %157 = vrot.lane.b32.xlu0 %v1349_v10, %s1223_s17 }
  0xa4   :  { %291 = vrot.lane.b32.xlu1 %v1349_v10, %s1222_s2 }
 0x106   :  { %v264_v11 = vpop.permute.xlu1 %263  ;;  %v130_v12 = vpop.permute.xlu0 %129 }
 0x107   :  { %1033 = vmatpush.xpose.msk.msrb.mxu0 %vm131_vm1, %v130_v12  ;;  %1039 = vmatpush.xpose.msk.msra.mxu1 %vm131_vm1, %v264_v11 }
 0x10a   :  { %1034 = vmatmul.msk.f32.vlgmr.msrb.gmra.mxu0 %vm131_vm1, %v1345_v8 }
 0x10b   :  { %445 = vmatpush.msra.mxu0 %v124_v0 }
 0x10e   :  { %v262_v13 = vpop.permute.xlu1 %261  ;;  %v158_v14 = vpop.permute.xlu0 %157 }
 0x10f   :  { %1035 = vmatpush.xpose.msk.msra.mxu2 %vm131_vm1, %v158_v14  ;;  %1040 = vmatmul.msk.f32.vlgmr.msra.gmra.mxu1 %vm131_vm1, %v262_v13 }
 0x112   :  { %1036 = vmatmul.msk.f32.vlgmr.msra.gmra.mxu2 %vm131_vm1, %v1349_v10 }
 0x116   :  { %v292_v15 = vpop.permute.xlu1 %291 }
 0x117   :  { %1041 = vmatpush.xpose.msk.msrb.mxu2 %vm131_vm1, %v292_v15  ;;  %v84_v15 = vld [vmem:[%s1541_s1 + $0x10] sm:$0xff] }
 0x11b   :  { %416 = vmatpush.msra.mxu2 %v125_v1 }
 0x187   :  { %v153_v16 = vpop.f32.mrf.mxu0 }
 0x188   :  { %v183_v18 = vmul.f32 0.35355338, %v153_v16 }
 0x18a   :  { %v185_v19 = vadd.f32 %v183_v18, %v82_v17 }
 0x18c   :  { %v286_v20 = vpop.f32.mrf.mxu1  ;;  %v187_v21 = vsel %vm131_vm1, %v185_v19, -inf }
 0x18d   :  { %v317_v23 = vmul.f32 0.35355338, %v286_v20  ;;  %188 = vmax.xlane.f32.xlu2 %v187_v21 }
 0x18f   :  { %v319_v24 = vadd.f32 %v317_v23, %v1371_v22 }
 0x191   :  { %v321_v25 = vsel %vm131_vm1, %v319_v24, -inf }
 0x192   :  { %322 = vmax.xlane.f32.xlu0 %v321_v25 }
 0x195   :  { %v180_v26 = vpop.f32.mrf.mxu2 }
 0x196   :  { %v184_v27 = vmul.f32 0.35355338, %v180_v26 }
 0x198   :  { %v186_v28 = vadd.f32 %v184_v27, %v82_v17 }
 0x19a   :  { %v190_v29 = vsel %vm131_vm1, %v186_v28, -inf }
 0x19b   :  { %191 = vmax.xlane.f32.xlu2 %v190_v29 }
 0x1a6   :  { %235 = vrot.lane.b32.xlu0 %v1349_v10, %s1225_s24 }
 0x1ae   :  { %289 = vrot.lane.b32.xlu0 %v1349_v10, %s1224_s18 }
 0x1b3   :  { %209 = vrot.lane.b32.xlu2 %v1345_v8, %s1225_s24 }
 0x1b6   :  { %455 = vrot.lane.b32.xlu0 %v1345_v8, %s1226_s0 }
 0x1be   :  { %483 = vrot.lane.b32.xlu0 %v1349_v10, %s1226_s0 }
 0x200   :  { %v189_v30 = vpop.xlane.xlu2 %188 }
 0x201   :  { %v193_v31 = vsub.f32 %v185_v19, %v189_v30 }
 0x203   :  { %v195_v32 = vmul.f32 1.442695, %v193_v31 }
 0x205   :  { %1094 = vpow2.f32 %v195_v32  ;;  %v323_v33 = vpop.xlane.xlu0 %322 }
 0x206   :  { %v327_v34 = vsub.f32 %v319_v24, %v323_v33 }
 0x208   :  { %v329_v35 = vmul.f32 1.442695, %v327_v34 }
 0x20a   :  { %1096 = vpow2.f32 %v329_v35 }
 0x20b   :  { %v1095_v36 = vpop.eup %1094 }
 0x20c   :  { %v199_v37 = vsel %vm131_vm1, %v1095_v36, 0.0 }
 0x20d   :  { %200 = vadd.xlane.f32.xlu1 %v199_v37 }
 0x20e   :  { %v192_v38 = vpop.xlane.xlu2 %191 }
 0x20f   :  { %v194_v39 = vsub.f32 %v186_v28, %v192_v38 }
 0x210   :  { %v1097_v40 = vpop.eup %1096 }
 0x211   :  { %v197_v41 = vmul.f32 1.442695, %v194_v39  ;;  %v333_v42 = vsel %vm131_vm1, %v1097_v40, 0.0 }
 0x212   :  { %334 = vadd.xlane.f32.xlu2 %v333_v42 }
 0x213   :  { %1098 = vpow2.f32 %v197_v41 }
 0x216   :  { %v210_v43 = vpop.permute.xlu2 %209 }
 0x217   :  { %230 = vmatpush.msra.mxu3 %v210_v43  ;;  %v126_v43 = vld [vmem:[%s1544_s4 + $0x10] sm:$0xff] }
 0x218   :  { %v236_v44 = vpop.permute.xlu0 %235 }
 0x219   :  { %v1099_v45 = vpop.eup %1098  ;;  %256 = vmatpush.msrb.mxu3 %v236_v44 }
 0x21a   :  { %v202_v46 = vsel %vm131_vm1, %v1099_v45, 0.0 }
 0x21b   :  { %203 = vadd.xlane.f32.xlu2 %v202_v46 }
 0x220   :  { %v290_v47 = vpop.permute.xlu0 %289 }
 0x221   :  { %1042 = vmatmul.msk.f32.vlgmr.msrb.gmra.mxu2 %vm131_vm1, %v290_v47 }
 0x222   :  { %608 = vmatpush.msrb.mxu2 %v126_v43 }
 0x226   :  { %343 = vrot.lane.b32.xlu1 %v1345_v8, %s1227_s6 }
 0x228   :  { %v456_v56 = vpop.permute.xlu0 %455 }
 0x230   :  { %v484_v20 = vpop.permute.xlu0 %483 }
 0x233   :  { %453 = vrot.lane.b32.xlu2 %v1345_v8, %s1228_s25 }
 0x280   :  { %v201_v48 = vpop.xlane.xlu1 %200 }
 0x281   :  { %1100 = vrcp.f32 %v201_v48 }
 0x285   :  { %v335_v49 = vpop.xlane.xlu2 %334 }
 0x287   :  { %v1101_v50 = vpop.eup %1100 }
 0x288   :  { %v207_v51 = vmul.f32 %v1101_v50, %v1095_v36 }
 0x28a   :  { %1037 = vmatmul.msk.f32.vlgmr.msra.gmra.mxu3 %vm131_vm1, %v207_v51 }
 0x28e   :  { %v204_v52 = vpop.xlane.xlu2 %203 }
 0x28f   :  { %1102 = vrcp.f32 %v204_v52 }
 0x290   :  { %1104 = vrcp.f32 %v335_v49 }
 0x295   :  { %v1103_v53 = vpop.eup %1102 }
 0x296   :  { %v208_v54 = vmul.f32 %v1103_v53, %v1099_v45  ;;  %v1105_v57 = vpop.eup %1104  ;;  %v454_v61 = vpop.permute.xlu2 %453  ;;  %v85_v53 = vld [vmem:[%s1541_s1 + $0x18] sm:$0xff]  ;;  %s1232_s1 = smov 40  }
 0x297   :  { %v341_v58 = vmul.f32 %v1105_v57, %v1097_v40 }
 0x298   :  { %v344_v55 = vpop.permute.xlu1 %343  ;;  %1038 = vmatmul.msk.f32.vlgmr.msrb.gmra.mxu3 %vm131_vm1, %v208_v54 }
 0x299   :  { %364 = vmatpush.msra.mxu3 %v344_v55 }
 0x29b   :  { %1049 = vmatpush.xpose.msk.msrb.mxu3 %vm131_vm1, %v456_v56 }
 0x2a0   :  { %1043 = vmatmul.msk.f32.vlgmr.msra.gmra.mxu3 %vm131_vm1, %v341_v58 }
 0x2a4   :  { %v314_v59 = vpop.f32.mrf.mxu2 }
 0x2a5   :  { %v318_v60 = vmul.f32 0.35355338, %v314_v59 }
 0x2a7   :  { %v320_v62 = vadd.f32 %v318_v60, %v1371_v22 }
 0x2a8   :  { %1050 = vmatmul.msk.f32.vlgmr.msrb.gmra.mxu3 %vm131_vm1, %v454_v61 }
 0x2a9   :  { %v324_v63 = vsel %vm131_vm1, %v320_v62, -inf }
 0x2aa   :  { %325 = vmax.xlane.f32.xlu1 %v324_v63 }
 0x2c3   :  { %369 = vrot.lane.b32.xlu1 %v1349_v10, %s1227_s6 }
 0x2cb   :  { %535 = vrot.lane.b32.xlu1 %v1345_v8, %s1229_s26 }
 0x2d3   :  { %648 = vrot.lane.b32.xlu1 %v1349_v10, %s1230_s27 }
 0x2db   :  { %646 = vrot.lane.b32.xlu1 %v1349_v10, %s1231_s28 }
 0x30d   :  { %v232_v2 = vpop.f32.mrf.mxu3 }
 0x30e   :  { %1047 = vmatmul.msk.f32.vlgmr.msra.gmra.mxu0 %vm131_vm1, %v232_v2 }
 0x31b   :  { %v258_v3 = vpop.f32.mrf.mxu3 }
 0x31c   :  { %1048 = vmatmul.msk.f32.gmra.mxu0 %vm131_vm1, %v258_v3 }
 0x31d   :  { %v326_v6 = vpop.xlane.xlu1 %325 }
 0x31e   :  { %v328_v7 = vsub.f32 %v320_v62, %v326_v6 }
 0x320   :  { %v331_v9 = vmul.f32 1.442695, %v328_v7 }
 0x322   :  { %1106 = vpow2.f32 %v331_v9 }
 0x323   :  { %v366_v11 = vpop.f32.mrf.mxu3 }
 0x324   :  { %1045 = vmatmul.msk.f32.vlgmr.msra.gmra.mxu2 %vm131_vm1, %v366_v11 }
 0x328   :  { %v1107_v12 = vpop.eup %1106 }
 0x329   :  { %v336_v13 = vsel %vm131_vm1, %v1107_v12, 0.0 }
 0x32a   :  { %337 = vadd.xlane.f32.xlu2 %v336_v13 }
 0x32b   :  { %v478_v14 = vpop.f32.mrf.mxu3 }
 0x32c   :  { %v509_v16 = vmul.f32 0.35355338, %v478_v14 }
 0x32e   :  { %v511_v17 = vadd.f32 %v509_v16, %v84_v15 }
 0x330   :  { %v513_v18 = vsel %vm131_vm1, %v511_v17, -inf }
 0x331   :  { %514 = vmax.xlane.f32.xlu0 %v513_v18 }
 0x335   :  { %v370_v19 = vpop.permute.xlu1 %369 }
 0x336   :  { %390 = vmatpush.msrb.mxu1 %v370_v19 }
 0x338   :  { %1051 = vmatpush.xpose.msk.msra.mxu1 %vm131_vm1, %v484_v20 }
 0x33d   :  { %v536_v21 = vpop.permute.xlu1 %535 }
 0x33e   :  { %556 = vmatpush.msra.mxu3 %v536_v21 }
 0x342   :  { %481 = vrot.lane.b32.xlu2 %v1349_v10, %s1228_s25 }
 0x345   :  { %v649_v22 = vpop.permute.xlu1 %648  ;;  %620 = vrot.lane.b32.xlu0 %v1345_v8, %s1230_s27  ;;  %s1017_s27 = sshll.u32 %s1554_s14, 4  ;;  %s1018_s27 = int_to_ptr.hbm [resolvable:$true] %s1017_s27 }
 0x346   :  { %1059 = vmatpush.xpose.msk.msrb.mxu3 %vm131_vm1, %v649_v22 }
 0x34d   :  { %v647_v41 = vpop.permute.xlu1 %646 }
 0x38b   :  { %v1437_v44 = vpop.f32.mrf.mxu0 }
 0x399   :  { %v1439_v48 = vpop.f32.mrf.mxu0 }
 0x39d   :  { %v338_v23 = vpop.xlane.xlu2 %337 }
 0x39e   :  { %1108 = vrcp.f32 %v338_v23 }
 0x3a4   :  { %v1109_v24 = vpop.eup %1108  ;;  %v515_v25 = vpop.xlane.xlu0 %514 }
 0x3a5   :  { %v519_v26 = vsub.f32 %v511_v17, %v515_v25  ;;  %v342_v27 = vmul.f32 %v1109_v24, %v1107_v12  ;;  %v482_v29 = vpop.permute.xlu2 %481 }
 0x3a7   :  { %v521_v28 = vmul.f32 1.442695, %v519_v26  ;;  %1044 = vmatmul.msk.f32.vlgmr.msrb.gmra.mxu1 %vm131_vm1, %v342_v27  ;;  %v418_v25 = vpop.f32.mrf.mxu2 }
 0x3a9   :  { %1110 = vpow2.f32 %v521_v28  ;;  %v448_v28 = vadd.f32 %v1437_v44, %v418_v25  ;;  %v1233_v44 = vmov 32.0  }
 0x3af   :  { %v1111_v30 = vpop.eup %1110  ;;  %1052 = vmatmul.msk.f32.vlgmr.msra.gmra.mxu1 %vm131_vm1, %v482_v29 }
 0x3b0   :  { %v525_v31 = vsel %vm131_vm1, %v1111_v30, 0.0 }
 0x3b1   :  { %526 = vadd.xlane.f32.xlu0 %v525_v31 }
 0x3b7   :  { %v621_v32 = vpop.permute.xlu0 %620 }
 0x3b8   :  { %1057 = vmatpush.xpose.msk.msrb.mxu0 %vm131_vm1, %v621_v32 }
 0x3c5   :  { %618 = vrot.lane.b32.xlu0 %v1345_v8, %s1231_s28 }
 0x424   :  { %v392_v33 = vpop.f32.mrf.mxu1  ;;  %v527_v34 = vpop.xlane.xlu0 %526 }
 0x425   :  { %1112 = vrcp.f32 %v527_v34  ;;  %1046 = vmatmul.msk.f32.gmra.mxu2 %vm131_vm1, %v392_v33 }
 0x42b   :  { %v1113_v35 = vpop.eup %1112 }
 0x42c   :  { %v533_v36 = vmul.f32 %v1113_v35, %v1111_v30  ;;  %v506_v37 = vpop.f32.mrf.mxu1  ;;  %v1087_v30 = vld [vmem:[%s1545_s5] ss:$0 sm:$0xff] }
 0x42d   :  { %v510_v38 = vmul.f32 0.35355338, %v506_v37 }
 0x42e   :  { %1053 = vmatmul.msk.f32.vlgmr.msra.gmra.mxu3 %vm131_vm1, %v533_v36 }
 0x42f   :  { %v512_v39 = vadd.f32 %v510_v38, %v84_v15 }
 0x431   :  { %v516_v40 = vsel %vm131_vm1, %v512_v39, -inf }
 0x432   :  { %517 = vmax.xlane.f32.xlu2 %v516_v40 }
 0x436   :  { %1060 = vmatmul.msk.f32.vlgmr.msrb.gmra.mxu3 %vm131_vm1, %v647_v41 }
 0x437   :  { %v619_v42 = vpop.permute.xlu0 %618 }
 0x438   :  { %1058 = vmatmul.msk.f32.vlgmr.msrb.gmra.mxu0 %vm131_vm1, %v619_v42 }
 0x4a5   :  { %v518_v45 = vpop.xlane.xlu2 %517 }
 0x4a6   :  { %v520_v46 = vsub.f32 %v512_v39, %v518_v45 }
 0x4a8   :  { %v523_v47 = vmul.f32 1.442695, %v520_v46  ;;  %v421_v26 = vpop.f32.mrf.mxu2 }
 0x4a9   :  { %v451_v35 = vadd.f32 %v1439_v48, %v421_v26 }
 0x4aa   :  { %1114 = vpow2.f32 %v523_v47 }
 0x4b0   :  { %v1115_v49 = vpop.eup %1114 }
 0x4b1   :  { %v558_v50 = vpop.f32.mrf.mxu3  ;;  %v528_v51 = vsel %vm131_vm1, %v1115_v49, 0.0 }
 0x4b2   :  { %529 = vadd.xlane.f32.xlu2 %v528_v51  ;;  %1055 = vmatmul.msk.f32.vlgmr.msrb.gmra.mxu2 %vm131_vm1, %v558_v50 }
 0x4b5   :  { %v643_v52 = vpop.f32.mrf.mxu0 }
 0x4b6   :  { %v674_v54 = vmul.f32 0.35355338, %v643_v52 }
 0x4b8   :  { %v676_v55 = vadd.f32 %v674_v54, %v85_v53 }
 0x4b9   :  { %v671_v56 = vpop.f32.mrf.mxu3 }
 0x4ba   :  { %v675_v57 = vmul.f32 0.35355338, %v671_v56  ;;  %v678_v58 = vsel %vm131_vm1, %v676_v55, -inf }
 0x4bb   :  { %679 = vmax.xlane.f32.xlu0 %v678_v58 }
 0x4bc   :  { %v677_v59 = vadd.f32 %v675_v57, %v85_v53 }
 0x4be   :  { %v681_v60 = vsel %vm131_vm1, %v677_v59, -inf }
 0x4bf   :  { %682 = vmax.xlane.f32.xlu1 %v681_v60  ;;  %v856_v60 = vld [vmem:[#allocation5 + $0x10] sm:$0xff] }
 0x4d8   :  { %561 = vrot.lane.b32.xlu1 %v1349_v10, %s1229_s26 }
 0x525   :  { %v530_v9 = vpop.xlane.xlu2 %529 }
 0x52e   :  { %v680_v61 = vpop.xlane.xlu0 %679 }
 0x52f   :  { %v684_v62 = vsub.f32 %v676_v55, %v680_v61  ;;  %v855_v61 = vld [vmem:[#allocation5 + $0x8] sm:$0xff] }
 0x531   :  { %v686_v63 = vmul.f32 1.442695, %v684_v62  ;;  %v854_v62 = vld [vmem:[#allocation5] sm:$0xff] }
 0x532   :  { %v683_v0 = vpop.xlane.xlu1 %682 }
 0x533   :  { %1116 = vpow2.f32 %v686_v63  ;;  %v685_v1 = vsub.f32 %v677_v59, %v683_v0  ;;  %v857_v59 = vld [vmem:[#allocation5 + $0x18] sm:$0xff] }
 0x535   :  { %v688_v2 = vmul.f32 1.442695, %v685_v1  ;;  %v610_v27 = vpop.f32.mrf.mxu2 }
 0x536   :  { %v616_v29 = vadd.f32 %v610_v27, %v448_v28 }
 0x537   :  { %1118 = vpow2.f32 %v688_v2 }
 0x538   :  { %1120 = vrcp.f32 %v530_v9 }
 0x539   :  { %v1117_v3 = vpop.eup %1116 }
 0x53a   :  { %v690_v6 = vsel %vm131_vm1, %v1117_v3, 0.0 }
 0x53b   :  { %691 = vadd.xlane.f32.xlu0 %v690_v6 }
 0x53d   :  { %v1119_v7 = vpop.eup %1118 }
 0x53e   :  { %v693_v11 = vsel %vm131_vm1, %v1119_v7, 0.0  ;;  %v1121_v12 = vpop.eup %1120 }
 0x53f   :  { %694 = vadd.xlane.f32.xlu2 %v693_v11  ;;  %v534_v13 = vmul.f32 %v1121_v12, %v1115_v49 }
 0x54a   :  { %v562_v14 = vpop.permute.xlu1 %561 }
 0x54b   :  { %582 = vmatpush.msrb.mxu1 %v562_v14 }
 0x54c   :  { %1054 = vmatmul.msk.f32.vlgmr.msrb.gmra.mxu1 %vm131_vm1, %v534_v13 }
 0x54f   :  { %700 = vrot.lane.b32.xlu0 %v1345_v8, %s1232_s1  ;;  %v127_v8 = vld [vmem:[%s1544_s4 + $0x18] sm:$0xff] }
 0x550   :  { %773 = vmatpush.msra.mxu3 %v127_v8 }
 0x557   :  { %726 = vrot.lane.b32.xlu2 %v1349_v10, %s1232_s1 }
 0x5ae   :  { %v692_v16 = vpop.xlane.xlu0 %691 }
 0x5b2   :  { %v695_v15 = vpop.xlane.xlu2 %694 }
 0x5b3   :  { %1122 = vrcp.f32 %v695_v15 }
 0x5b4   :  { %1124 = vrcp.f32 %v692_v16 }
 0x5b5   :  { %1126 = vrcp.f32 %v1233_v44 }
 0x5b9   :  { %v1123_v17 = vpop.eup %1122 }
 0x5ba   :  { %v699_v18 = vmul.f32 %v1123_v17, %v1119_v7  ;;  %v727_v19 = vpop.permute.xlu2 %726  ;;  %v1125_v20 = vpop.eup %1124  ;;  %v1088_v17 = vld [vmem:[%s1550_s10] ss:$0 sm:$0xff] }
 0x5bb   :  { %747 = vmatpush.msra.mxu0 %v727_v19  ;;  %v698_v21 = vmul.f32 %v1125_v20, %v1117_v3  ;;  %v1127_v45 = vpop.eup %1126 }
 0x5bc   :  { %1062 = vmatmul.msk.f32.vlgmr.msra.gmra.mxu0 %vm131_vm1, %v699_v18  ;;  %v798_v46 = vmul.f32 32.0, %v1127_v45  ;;  %vm802_vm2 = vweird.f32 %v1127_v45 }
 0x5be   :  { %v799_v47 = vsub.f32 1.0, %v798_v46 }
 0x5c0   :  { %v800_v48 = vmul.f32 %v1127_v45, %v799_v47 }
 0x5c1   :  { %v701_v22 = vpop.permute.xlu0 %700 }
 0x5c2   :  { %721 = vmatpush.msra.mxu1 %v701_v22  ;;  %v801_v49 = vadd.f32 %v1127_v45, %v800_v48 }
 0x5c3   :  { %1061 = vmatmul.msk.f32.vlgmr.msra.gmra.mxu1 %vm131_vm1, %v698_v21  ;;  %v1089_v21 = vld [vmem:[%s1551_s11] ss:$0 sm:$0xff] }
 0x5c4   :  { %880 = vmatpush.msrb.mxu1 %v857_v59  ;;  %v1091_v59 = vld [vmem:[%s1549_s9] ss:$0 sm:$0xff] }
 0x5c6   :  { %881 = vmatpush.msrb.mxu1 %v856_v60 }
 0x5c8   :  { %882 = vmatpush.msrb.mxu1 %v855_v61 }
 0x5c9   :  { %v584_v23 = vpop.f32.mrf.mxu1 }
 0x5ca   :  { %1056 = vmatmul.msk.f32.gmra.mxu2 %vm131_vm1, %v584_v23  ;;  %883 = vmatpush.msrb.mxu1 %v854_v62 }
 0x639   :  { %v749_v24 = vpop.f32.mrf.mxu0 }
 0x640   :  { %v723_v10 = vpop.f32.mrf.mxu1 }
 0x641   :  { %1063 = vmatmul.msk.f32.vlgmr.msra.gmra.mxu3 %vm131_vm1, %v723_v10 }
 0x649   :  { %1064 = vmatmul.msk.f32.gmra.mxu3 %vm131_vm1, %v749_v24 }
 0x64d   :  { %v613_v34 = vpop.f32.mrf.mxu2 }
 0x64e   :  { %v617_v37 = vadd.f32 %v613_v34, %v451_v35  ;;  %v911_v34 = vld [vmem:[%s1548_s8 + $0x10] sm:$0xff]  ;;  %v910_v35 = vld [vmem:[%s1548_s8 + $0x8] sm:$0xff] }
 0x6c4   :  { %v775_v31 = vpop.f32.mrf.mxu3 }
 0x6c5   :  { %v781_v32 = vadd.f32 %v775_v31, %v616_v29  ;;  %v916_v29 = vld [vmem:[%s1548_s8 + $0x38] sm:$0xff]  ;;  %v914_v31 = vld [vmem:[%s1548_s8 + $0x28] sm:$0xff] }
 0x6c6   :  { %936 = vmatpush.msra.mxu2 %v916_v29 }
 0x6c7   :  { %v787_v33 = vadd.f32 %v1087_v30, %v781_v32  ;;  %v913_v32 = vld [vmem:[%s1548_s8 + $0x20] sm:$0xff] }
 0x6c9   :  { %v789_v36 = vadd.f32 %v787_v33, %v1334_v4  ;;  %v1472_v4 = vsel %vm802_vm2, %v1127_v45, %v801_v49  ;;  %v912_v33 = vld [vmem:[%s1548_s8 + $0x18] sm:$0xff] }
 0x6cb   :  { %v791_v38 = vsel %vm94_vm0, %v789_v36, 0.0 }
 0x6cc   :  { %792 = vadd.xlane.f32.xlu1 %v791_v38  ;;  %v778_v39 = vpop.f32.mrf.mxu3 }
 0x6cd   :  { %v782_v40 = vadd.f32 %v778_v39, %v617_v37  ;;  %v1090_v37 = vld [vmem:[%s1547_s7] ss:$0 sm:$0xff] }
 0x6cf   :  { %v788_v41 = vadd.f32 %v1087_v30, %v782_v40  ;;  %v915_v30 = vld [vmem:[%s1548_s8 + $0x30] sm:$0xff] }
 0x6d0   :  { %937 = vmatpush.msra.mxu2 %v915_v30  ;;  %v1092_v30 = vld [vmem:[%s1552_s12] ss:$0 sm:$0xff]  ;;  %s1234_s12 = smov [#allocation7]  }
 0x6d1   :  { %v790_v42 = vadd.f32 %v788_v41, %v1338_v5  ;;  %s1015_s25 = sshll.u32 %s1234_s12, 4  ;;  %s1016_s25 = int_to_ptr.vmem [resolvable:$true] %s1015_s25 }
 0x6d2   :  { %938 = vmatpush.msra.mxu2 %v914_v31 }
 0x6d3   :  { %v794_v43 = vsel %vm94_vm0, %v790_v42, 0.0 }
 0x6d4   :  { %795 = vadd.xlane.f32.xlu0 %v794_v43  ;;  %939 = vmatpush.msra.mxu2 %v913_v32 }
 0x6d6   :  { %940 = vmatpush.msra.mxu2 %v912_v33  ;;  %v1093_v33 = vld [vmem:[%s1553_s13] ss:$0 sm:$0xff] }
 0x6d8   :  { %941 = vmatpush.msra.mxu2 %v911_v34 }
 0x6da   :  { %942 = vmatpush.msra.mxu2 %v910_v35 }
 0x73f   :  { %v793_v50 = vpop.xlane.xlu1 %792 }
 0x740   :  { %v804_v51 = vmul.f32 %v1472_v4, %v793_v50 }
 0x742   :  { %v806_v52 = vsub.f32 %v789_v36, %v804_v51  ;;  %v909_v36 = vld [vmem:[%s1548_s8] sm:$0xff] }
 0x743   :  { %943 = vmatpush.msra.mxu2 %v909_v36 }
 0x744   :  { %v808_v53 = vmul.f32 %v806_v52, %v806_v52 }
 0x746   :  { %v810_v5 = vsel %vm94_vm0, %v808_v53, 0.0 }
 0x747   :  { %811 = vadd.xlane.f32.xlu2 %v810_v5  ;;  %v796_v54 = vpop.xlane.xlu0 %795 }
 0x748   :  { %v805_v55 = vmul.f32 %v1472_v4, %v796_v54 }
 0x74a   :  { %v807_v56 = vsub.f32 %v790_v42, %v805_v55 }
 0x74c   :  { %v809_v57 = vmul.f32 %v807_v56, %v807_v56 }
 0x74e   :  { %v813_v58 = vsel %vm94_vm0, %v809_v57, 0.0 }
 0x74f   :  { %814 = vadd.xlane.f32.xlu1 %v813_v58 }
 0x7ba   :  { %v812_v63 = vpop.xlane.xlu2 %811 }
 0x7bb   :  { %v816_v0 = vmul.f32 %v812_v63, %v1472_v4 }
 0x7bd   :  { %v818_v1 = vadd.f32 1e-05, %v816_v0 }
 0x7bf   :  { %1128 = vrsqrt.f32 %v818_v1  ;;  %vm826_vm4 = vweird.f32 %v818_v1 }
 0x7c2   :  { %v815_v2 = vpop.xlane.xlu1 %814 }
 0x7c3   :  { %v817_v3 = vmul.f32 %v815_v2, %v1472_v4 }
 0x7c5   :  { %v1129_v6 = vpop.eup %1128  ;;  %v819_v7 = vadd.f32 1e-05, %v817_v3 }
 0x7c6   :  { %v821_v9 = vmul.f32 %v1129_v6, %v818_v1  ;;  %vm827_vm3 = vweird.f32 %v1129_v6 }
 0x7c7   :  { %1130 = vrsqrt.f32 %v819_v7  ;;  %vm828_vm5 = vmor %vm826_vm4, %vm827_vm3  ;;  %vm836_vm7 = vweird.f32 %v819_v7 }
 0x7c8   :  { %v822_v11 = vmul.f32 %v1129_v6, %v821_v9 }
 0x7ca   :  { %v823_v12 = vmul.f32 0.5, %v822_v11 }
 0x7cc   :  { %v824_v13 = vsub.f32 1.5, %v823_v12 }
 0x7cd   :  { %v1131_v14 = vpop.eup %1130 }
 0x7ce   :  { %v825_v15 = vmul.f32 %v1129_v6, %v824_v13  ;;  %v831_v16 = vmul.f32 %v1131_v14, %v819_v7  ;;  %vm837_vm6 = vweird.f32 %v1131_v14 }
 0x7cf   :  { %vm838_vm8 = vmor %vm836_vm7, %vm837_vm6 }
 0x7d0   :  { %v829_v18 = vsel %vm828_vm5, %v1129_v6, %v825_v15  ;;  %v832_v19 = vmul.f32 %v1131_v14, %v831_v16 }
 0x7d1   :  { %v840_v20 = vmul.f32 %v829_v18, %v806_v52 }
 0x7d2   :  { %v833_v22 = vmul.f32 0.5, %v832_v19 }
 0x7d3   :  { %v846_v23 = vmul.f32 %v1088_v17, %v840_v20 }
 0x7d4   :  { %v834_v8 = vsub.f32 1.5, %v833_v22 }
 0x7d5   :  { %v852_v10 = vadd.f32 %v1089_v21, %v846_v23 }
 0x7d6   :  { %v835_v24 = vmul.f32 %v1131_v14, %v834_v8 }
 0x7d7   :  { %1065 = vmatmul.msk.f32.vlgmr.msrb.gmra.mxu1 %vm94_vm0, %v852_v10 }
 0x7d8   :  { %v839_v25 = vsel %vm838_vm8, %v1131_v14, %v835_v24 }
 0x7d9   :  { %v841_v26 = vmul.f32 %v839_v25, %v807_v56 }
 0x7db   :  { %v847_v27 = vmul.f32 %v1088_v17, %v841_v26 }
 0x7dd   :  { %v853_v28 = vadd.f32 %v1089_v21, %v847_v27 }
 0x7df   :  { %1066 = vmatmul.msk.f32.gmra.mxu1 %vm94_vm0, %v853_v28 }
 0x854   :  { %v885_v38 = vpop.f32.mrf.mxu1 }
 0x855   :  { %v886_v39 = vadd.f32 %v1090_v37, %v885_v38 }
 0x857   :  { %v891_v40 = vmul.f32 %v886_v39, %v886_v39 }
 0x859   :  { %v893_v41 = vmul.f32 %v891_v40, %v886_v39 }
 0x85b   :  { %v895_v42 = vmul.f32 0.044715, %v893_v41 }
 0x85c   :  { %v888_v43 = vpop.f32.mrf.mxu1 }
 0x85d   :  { %v897_v44 = vadd.f32 %v895_v42, %v886_v39  ;;  %v889_v45 = vadd.f32 %v1090_v37, %v888_v43 }
 0x85f   :  { %v899_v46 = vmul.f32 0.7978846, %v897_v44  ;;  %v892_v47 = vmul.f32 %v889_v45, %v889_v45 }
 0x861   :  { %1132 = vtanh.f32 %v899_v46  ;;  %v894_v48 = vmul.f32 %v892_v47, %v889_v45 }
 0x863   :  { %v896_v49 = vmul.f32 0.044715, %v894_v48 }
 0x865   :  { %v898_v50 = vadd.f32 %v896_v49, %v889_v45 }
 0x867   :  { %v1133_v51 = vpop.eup %1132  ;;  %v900_v52 = vmul.f32 0.7978846, %v898_v50 }
 0x868   :  { %v903_v53 = vadd.f32 1.0, %v1133_v51 }
 0x869   :  { %1134 = vtanh.f32 %v900_v52 }
 0x86a   :  { %v905_v5 = vmul.f32 0.5, %v903_v53 }
 0x86c   :  { %v907_v54 = vmul.f32 %v905_v5, %v886_v39 }
 0x86e   :  { %1067 = vmatmul.msk.f32.vlgmr.msra.gmra.mxu2 %vm921_vm9, %v907_v54 }
 0x86f   :  { %v1135_v55 = vpop.eup %1134 }
 0x870   :  { %v904_v56 = vadd.f32 1.0, %v1135_v55 }
 0x872   :  { %v906_v57 = vmul.f32 0.5, %v904_v56 }
 0x874   :  { %v908_v58 = vmul.f32 %v906_v57, %v889_v45 }
 0x876   :  { %1068 = vmatmul.msk.f32.gmra.mxu2 %vm921_vm9, %v908_v58 }
 0x8f1   :  { %v945_v60 = vpop.f32.mrf.mxu2 }
 0x8f2   :  { %v946_v61 = vadd.f32 %v1091_v59, %v945_v60 }
 0x8f4   :  { %v951_v62 = vadd.f32 %v946_v61, %v852_v10 }
 0x8f6   :  { %v953_v63 = vsel %vm94_vm0, %v951_v62, 0.0 }
 0x8f7   :  { %954 = vadd.xlane.f32.xlu0 %v953_v63 }
 0x8f9   :  { %v948_v0 = vpop.f32.mrf.mxu2 }
 0x8fa   :  { %v949_v1 = vadd.f32 %v1091_v59, %v948_v0 }
 0x8fc   :  { %v952_v2 = vadd.f32 %v949_v1, %v853_v28 }
 0x8fe   :  { %v956_v3 = vsel %vm94_vm0, %v952_v2, 0.0 }
 0x8ff   :  { %957 = vadd.xlane.f32.xlu1 %v956_v3 }
 0x96a   :  { %v955_v6 = vpop.xlane.xlu0 %954 }
 0x96b   :  { %v959_v7 = vmul.f32 %v955_v6, %v1472_v4 }
 0x96d   :  { %v961_v9 = vsub.f32 %v951_v62, %v959_v7 }
 0x96f   :  { %v963_v11 = vmul.f32 %v961_v9, %v961_v9 }
 0x971   :  { %v965_v12 = vsel %vm94_vm0, %v963_v11, 0.0 }
 0x972   :  { %v958_v13 = vpop.xlane.xlu1 %957  ;;  %966 = vadd.xlane.f32.xlu0 %v965_v12 }
 0x973   :  { %v960_v14 = vmul.f32 %v958_v13, %v1472_v4 }
 0x975   :  { %v962_v15 = vsub.f32 %v952_v2, %v960_v14 }
 0x977   :  { %v964_v16 = vmul.f32 %v962_v15, %v962_v15 }
 0x979   :  { %v968_v17 = vsel %vm94_vm0, %v964_v16, 0.0 }
 0x97a   :  { %969 = vadd.xlane.f32.xlu2 %v968_v17 }
 0x9e5   :  { %v967_v18 = vpop.xlane.xlu0 %966 }
 0x9e6   :  { %v971_v19 = vmul.f32 %v967_v18, %v1472_v4 }
 0x9e8   :  { %v973_v20 = vadd.f32 1e-05, %v971_v19 }
 0x9ea   :  { %1136 = vrsqrt.f32 %v973_v20  ;;  %vm981_vm11 = vweird.f32 %v973_v20 }
 0x9ed   :  { %v970_v21 = vpop.xlane.xlu2 %969 }
 0x9ee   :  { %v972_v22 = vmul.f32 %v970_v21, %v1472_v4 }
 0x9f0   :  { %v1137_v23 = vpop.eup %1136  ;;  %v974_v8 = vadd.f32 1e-05, %v972_v22 }
 0x9f1   :  { %v976_v10 = vmul.f32 %v1137_v23, %v973_v20  ;;  %vm982_vm10 = vweird.f32 %v1137_v23 }
 0x9f2   :  { %1138 = vrsqrt.f32 %v974_v8  ;;  %vm983_vm12 = vmor %vm981_vm11, %vm982_vm10  ;;  %vm991_vm14 = vweird.f32 %v974_v8 }
 0x9f3   :  { %v977_v24 = vmul.f32 %v1137_v23, %v976_v10 }
 0x9f5   :  { %v978_v25 = vmul.f32 0.5, %v977_v24 }
 0x9f7   :  { %v979_v26 = vsub.f32 1.5, %v978_v25 }
 0x9f8   :  { %v1139_v27 = vpop.eup %1138 }
 0x9f9   :  { %v980_v28 = vmul.f32 %v1137_v23, %v979_v26  ;;  %v986_v29 = vmul.f32 %v1139_v27, %v974_v8  ;;  %vm992_vm13 = vweird.f32 %v1139_v27 }
 0x9fa   :  { %vm993_vm15 = vmor %vm991_vm14, %vm992_vm13 }
 0x9fb   :  { %v984_v31 = vsel %vm983_vm12, %v1137_v23, %v980_v28  ;;  %v987_v32 = vmul.f32 %v1139_v27, %v986_v29 }
 0x9fc   :  { %v995_v4 = vmul.f32 %v984_v31, %v961_v9 }
 0x9fd   :  { %v988_v34 = vmul.f32 0.5, %v987_v32 }
 0x9fe   :  { %v1001_v35 = vmul.f32 %v1092_v30, %v995_v4 }
 0x9ff   :  { %v989_v36 = vsub.f32 1.5, %v988_v34 }
 0xa00   :  { %v1007_v37 = vadd.f32 %v1093_v33, %v1001_v35 }
 0xa01   :  { %v990_v38 = vmul.f32 %v1139_v27, %v989_v36 }
 0xa02   :  { %1009 = vst.msk [vmem:[#allocation7] sm:$0xff] %vm94_vm0, %v1007_v37 }
 0xa03   :  { %v994_v39 = vsel %vm993_vm15, %v1139_v27, %v990_v38 }
 0xa04   :  { %v996_v40 = vmul.f32 %v994_v39, %v962_v15 }
 0xa06   :  { %v1002_v41 = vmul.f32 %v1092_v30, %v996_v40 }
 0xa08   :  { %v1008_v42 = vadd.f32 %v1093_v33, %v1002_v41 }
 0xa0a   :  { %1010 = vst.msk [vmem:[#allocation7 + $0x8] sm:$0xff] %vm94_vm0, %v1008_v42 }
 0xa0b   :  { %1023 = dma.vmem_to_hbm [thread:$0]  %s1016_s25, 256, %s1018_s27, [#allocation4], %s1219_s21, %s1219_s21, %s1220_s22  }
 0xa0c   :  { %1216 = dma.done.wait [#allocation4], 256  }
 0xa0d   :  { %1217 = vsyncadd [#allocation4], 4294967040 }
 0xa0e   :  { %1028 = vsyncpa [#allocation3], 1 }
 0xa0f   :  { %1029 = vsyncpa [#allocation6], 1 }
 0xa10   :  { %1030 = vsyncpa [#allocation4], 1 }

</bundles_post_ra>
